<compile_context>
chip_gen: v7x
topology: tpu7x:2x2x1
jax: 0.10.0
libtpu: 0.0.40
codegen_flags: <defaults>
</compile_context>

<pallas_src>
import functools
import math

import jax
import jax.numpy as jnp
from jax.experimental import pallas as pl
from jax.experimental.pallas import tpu as pltpu

EPS = 1e-5


# ----------------------------------------------------------------------------
# in-kernel helpers
# ----------------------------------------------------------------------------
def _conv3x3_rows(x_bf16, m_ref, H):
    """3x3 'SAME' conv on row-stacked lane-dense activations.

    x_bf16: (M, W*Ci) bf16, M = (#images in block) * H, rows are (n, h)
            row-major so each consecutive H-row group is one image.
    m_ref : (3, W*Ci, W*Co) bf16 banded conv-as-GEMM weights (one per vertical
            tap ky); horizontal taps and horizontal zero-padding live in the
            band structure.
    Returns the (M, W*Co) f32 accumulator.
    """
    M = x_bf16.shape[0]
    a0 = jnp.dot(x_bf16, m_ref[0], preferred_element_type=jnp.float32)  # tap from row above
    a1 = jnp.dot(x_bf16, m_ref[1], preferred_element_type=jnp.float32)  # center tap
    a2 = jnp.dot(x_bf16, m_ref[2], preferred_element_type=jnp.float32)  # tap from row below

    # vertical shift of the tap results on the sublane axis (XLU) + per-image
    # boundary masking (implicit vertical zero padding, also at batch seams)
    hrow = jax.lax.broadcasted_iota(jnp.int32, a1.shape, 0) % H
    acc = a1
    acc = acc + jnp.where(hrow == 0, 0.0, pltpu.roll(a0, shift=1, axis=0))
    acc = acc + jnp.where(hrow == H - 1, 0.0, pltpu.roll(a2, shift=M - 1, axis=0))
    return acc


def _bn_partials(acc_f32, g_ref):
    """Fused per-step BN partial stats: one (2, W*C) @ (W*C, C) dot -> (2, C)."""
    col = jnp.concatenate(
        [jnp.sum(acc_f32, axis=0, keepdims=True),
         jnp.sum(acc_f32 * acc_f32, axis=0, keepdims=True)], axis=0)
    return jnp.dot(col, g_ref[...], preferred_element_type=jnp.float32)


# ----------------------------------------------------------------------------
# kernels
# ----------------------------------------------------------------------------
def conv1_stats_kernel(x_ref, m_ref, g_ref, y_ref, st_ref, *, H):
    # x_ref : (TM, W*Cin)  bf16 row-stacked images
    # m_ref : (3, W*Cin, W*Cmid) bf16 banded conv weights
    # g_ref : (W*Cmid, Cmid) f32 lane -> channel group-sum matrix
    # y_ref : (TM, W*Cmid) bf16 raw conv1 output (pre-BN)
    # st_ref: (1, 2, Cmid) f32 per-step [sum, sum_sq] per channel
    acc = _conv3x3_rows(x_ref[...], m_ref, H)
    y_ref[...] = acc.astype(y_ref.dtype)
    st_ref[...] = _bn_partials(acc, g_ref)[None]


def bn_relu_conv2_stats_kernel(y1_ref, sc_ref, sh_ref, m_ref, g_ref,
                               y2_ref, st_ref, *, H):
    # folded BatchNorm1 + ReLU in f32 VPU math; bf16 only at HBM / MXU boundary
    h1 = jnp.maximum(
        y1_ref[...].astype(jnp.float32) * sc_ref[...] + sh_ref[...], 0.0)
    acc = _conv3x3_rows(h1.astype(jnp.bfloat16), m_ref, H)
    y2_ref[...] = acc.astype(y2_ref.dtype)
    st_ref[...] = _bn_partials(acc, g_ref)[None]


def bn_relu_kernel(y2_ref, sc_ref, sh_ref, o_ref):
    # folded BatchNorm2 + ReLU, lane-dense f32 output
    o_ref[...] = jnp.maximum(
        y2_ref[...].astype(jnp.float32) * sc_ref[...] + sh_ref[...], 0.0
    ).astype(o_ref.dtype)


# ----------------------------------------------------------------------------
# wrapper-side helpers (tiny, run in XLA between pallas_calls)
# ----------------------------------------------------------------------------
def _banded_conv_matrices(w, W):
    """w: (3, 3, Ci, Co) HWIO -> (3, W*Ci, W*Co) banded conv-as-GEMM weights.

    M[ky, wx*Ci + ci, wo*Co + co] = w[ky, wx - wo + 1, ci, co] if |wx-wo| <= 1
    else 0, so  sum_ky  rows_shifted_by_ky @ M[ky]  ==  3x3 conv, zero padded.
    """
    _, _, Ci, Co = w.shape
    wx = jnp.arange(W)[:, None]                       # input column
    wo = jnp.arange(W)[None, :]                       # output column
    kx = wx - wo + 1                                  # horizontal tap index
    valid = ((kx >= 0) & (kx <= 2)).astype(w.dtype)   # implicit horizontal pad
    band = w[:, jnp.clip(kx, 0, 2), :, :] * valid[None, :, :, None, None]
    band = jnp.transpose(band, (0, 1, 3, 2, 4))       # (3, W, Ci, W, Co)
    return band.reshape(3, W * Ci, W * Co)


def _fold_bn(stats, gamma, beta, count, W):
    """Per-step [sum, sum_sq] partials -> folded per-lane f32 scale/shift rows."""
    tot = jnp.sum(stats, axis=0)                      # (2, C)
    mean = tot[0] / count
    var = jnp.maximum(tot[1] / count - mean * mean, 0.0)
    scale = gamma * jax.lax.rsqrt(var + EPS)
    shift = beta - mean * scale
    C = scale.shape[0]
    return (jnp.tile(scale, W).reshape(1, W * C),
            jnp.tile(shift, W).reshape(1, W * C))


def _pick_images_per_step(N, H, target_rows=512):
    """Whole images per grid step so the matmul M dim is large (MXU rows)."""
    nb = max(1, min(N, target_rows // max(H, 1)))
    while N % nb:
        nb -= 1
    return nb


# ----------------------------------------------------------------------------
# DoubleConv forward
# ----------------------------------------------------------------------------
@jax.jit
def double_conv(x_nchw, w1, g1, b1, w2, g2, b2):
    """x_nchw: (N, Cin, H, W) f32 -> (N, Cout, H, W) f32; training-mode BN."""
    x = jnp.transpose(x_nchw, (0, 2, 3, 1)).astype(jnp.float32)   # NHWC
    N, H, W, Cin = x.shape
    Cmid = w1.shape[-1]
    Cout = w2.shape[-1]
    count = N * H * W

    nb = _pick_images_per_step(N, H)
    TM = nb * H                     # rows per grid step (whole images only)
    G = N // nb                     # grid length

    # lane-dense, row-stacked bf16 activations; bf16 banded weights
    x2 = x.reshape(N * H, W * Cin).astype(jnp.bfloat16)
    m1 = _banded_conv_matrices(w1.astype(jnp.float32), W).astype(jnp.bfloat16)
    m2 = _banded_conv_matrices(w2.astype(jnp.float32), W).astype(jnp.bfloat16)
    grp1 = jnp.tile(jnp.eye(Cmid, dtype=jnp.float32), (W, 1))     # (W*Cmid, Cmid)
    grp2 = jnp.tile(jnp.eye(Cout, dtype=jnp.float32), (W, 1))     # (W*Cout, Cout)

    params = pltpu.CompilerParams(dimension_semantics=("parallel",))

    # ---- stage 1: conv1 + per-step BN1 partial stats -------------------------
    flops1 = int(2 * (N * H) * (W * Cin) * (W * Cmid) * 3 + 4 * N * H * W * Cmid)
    bytes1 = int(2 * x2.size + 2 * m1.size + 4 * grp1.size
                 + 2 * N * H * W * Cmid + 4 * G * 2 * Cmid)
    y1, st1 = pl.pallas_call(
        functools.partial(conv1_stats_kernel, H=H),
        grid=(G,),
        in_specs=[pl.BlockSpec((TM, W * Cin), lambda i: (i, 0)),
                  pl.BlockSpec((3, W * Cin, W * Cmid), lambda i: (0, 0, 0)),
                  pl.BlockSpec((W * Cmid, Cmid), lambda i: (0, 0))],
        out_specs=[pl.BlockSpec((TM, W * Cmid), lambda i: (i, 0)),
                   pl.BlockSpec((1, 2, Cmid), lambda i: (i, 0, 0))],
        out_shape=[jax.ShapeDtypeStruct((N * H, W * Cmid), jnp.bfloat16),
                   jax.ShapeDtypeStruct((G, 2, Cmid), jnp.float32)],
        compiler_params=params,
        cost_estimate=pl.CostEstimate(flops=flops1, transcendentals=0,
                                      bytes_accessed=bytes1),
    )(x2, m1, grp1)

    sc1, sh1 = _fold_bn(st1, g1.astype(jnp.float32), b1.astype(jnp.float32),
                        count, W)

    # ---- stage 2: folded BN1 + ReLU + conv2 + BN2 partial stats ---------------
    flops2 = int(2 * (N * H) * (W * Cmid) * (W * Cout) * 3 + 7 * N * H * W * Cmid)
    bytes2 = int(2 * y1.size + 4 * (sc1.size + sh1.size + grp2.size)
                 + 2 * m2.size + 2 * N * H * W * Cout + 4 * G * 2 * Cout)
    y2, st2 = pl.pallas_call(
        functools.partial(bn_relu_conv2_stats_kernel, H=H),
        grid=(G,),
        in_specs=[pl.BlockSpec((TM, W * Cmid), lambda i: (i, 0)),
                  pl.BlockSpec((1, W * Cmid), lambda i: (0, 0)),
                  pl.BlockSpec((1, W * Cmid), lambda i: (0, 0)),
                  pl.BlockSpec((3, W * Cmid, W * Cout), lambda i: (0, 0, 0)),
                  pl.BlockSpec((W * Cout, Cout), lambda i: (0, 0))],
        out_specs=[pl.BlockSpec((TM, W * Cout), lambda i: (i, 0)),
                   pl.BlockSpec((1, 2, Cout), lambda i: (i, 0, 0))],
        out_shape=[jax.ShapeDtypeStruct((N * H, W * Cout), jnp.bfloat16),
                   jax.ShapeDtypeStruct((G, 2, Cout), jnp.float32)],
        compiler_params=params,
        cost_estimate=pl.CostEstimate(flops=flops2, transcendentals=0,
                                      bytes_accessed=bytes2),
    )(y1, sc1, sh1, m2, grp2)

    sc2, sh2 = _fold_bn(st2, g2.astype(jnp.float32), b2.astype(jnp.float32),
                        count, W)

    # ---- stage 3: folded BN2 + ReLU, lane-dense f32 output --------------------
    out = pl.pallas_call(
        bn_relu_kernel,
        grid=(G,),
        in_specs=[pl.BlockSpec((TM, W * Cout), lambda i: (i, 0)),
                  pl.BlockSpec((1, W * Cout), lambda i: (0, 0)),
                  pl.BlockSpec((1, W * Cout), lambda i: (0, 0))],
        out_specs=pl.BlockSpec((TM, W * Cout), lambda i: (i, 0)),
        out_shape=jax.ShapeDtypeStruct((N * H, W * Cout), jnp.float32),
        compiler_params=params,
    )(y2, sc2, sh2)

    out = out.reshape(N, H, W, Cout)                   # split (w, c) lanes in XLA
    return jnp.transpose(out, (0, 3, 1, 2))            # back to NCHW


# ----------------------------------------------------------------------------
# reference with the SAME quantization points (bf16 matmul operands,
# bf16-stored intermediates, f32 stats/affine) so the tolerance can be tight
# ----------------------------------------------------------------------------
def _reference(x_nchw, w1, g1, b1, w2, g2, b2):
    x = jnp.transpose(x_nchw, (0, 2, 3, 1)).astype(jnp.float32)
    N, H, W, _ = x.shape
    count = N * H * W

    def conv(h, w):
        return jax.lax.conv_general_dilated(
            h.astype(jnp.bfloat16), w.astype(jnp.bfloat16),
            window_strides=(1, 1), padding="SAME",
            dimension_numbers=("NHWC", "HWIO", "NHWC"),
            preferred_element_type=jnp.float32)

    def bn_fold(y_f32, g, b):
        s = jnp.sum(y_f32, axis=(0, 1, 2))
        q = jnp.sum(y_f32 * y_f32, axis=(0, 1, 2))
        mean = s / count
        var = jnp.maximum(q / count - mean * mean, 0.0)
        scale = g * jax.lax.rsqrt(var + EPS)
        return scale, b - mean * scale

    y1 = conv(x, w1)                                       # f32 accumulator
    sc1, sh1 = bn_fold(y1, g1, b1)                         # stats from f32
    h1 = jnp.maximum(                                      # affine on bf16-stored y1
        y1.astype(jnp.bfloat16).astype(jnp.float32) * sc1 + sh1, 0.0)
    y2 = conv(h1, w2)
    sc2, sh2 = bn_fold(y2, g2, b2)
    out = jnp.maximum(
        y2.astype(jnp.bfloat16).astype(jnp.float32) * sc2 + sh2, 0.0)
    return jnp.transpose(out, (0, 3, 1, 2))


if __name__ == "__main__":
    key = jax.random.PRNGKey(0)
    N, Cin, H, W = 2, 4, 16, 16
    Cmid = Cout = 8   # DoubleConv(4, 8): mid_channels defaults to out_channels

    kx_, kw1, kw2 = jax.random.split(key, 3)
    x = jax.random.normal(kx_, (N, Cin, H, W), jnp.float32)

    # deterministic conv weights (kaiming-uniform-like bound, as nn.Conv2d)
    bound1 = 1.0 / math.sqrt(Cin * 9)
    w1 = jax.random.uniform(kw1, (3, 3, Cin, Cmid), jnp.float32, -bound1, bound1)
    bound2 = 1.0 / math.sqrt(Cmid * 9)
    w2 = jax.random.uniform(kw2, (3, 3, Cmid, Cout), jnp.float32, -bound2, bound2)

    # BatchNorm affine params: PyTorch defaults (weight=1, bias=0)
    g1 = jnp.ones((Cmid,), jnp.float32)
    b1 = jnp.zeros((Cmid,), jnp.float32)
    g2 = jnp.ones((Cout,), jnp.float32)
    b2 = jnp.zeros((Cout,), jnp.float32)

    y = double_conv(x, w1, g1, b1, w2, g2, b2)
    jax.block_until_ready(y)
    assert y.shape == (N, Cout, H, W)

    y_ref = _reference(x, w1, g1, b1, w2, g2, b2)
    err = float(jnp.max(jnp.abs(y - y_ref)))
    assert err < 2e-3, f"max abs error vs reference: {err}"

    print("KERNEL_OK")
</pallas_src>

<mosaic_0001>
module attributes {stable_mosaic.version = 11 : i64} {
  func.func @conv1_stats_kernel(%arg0: i32, %arg1: memref<32x64xbf16, #tpu.memory_space<vmem>>, %arg2: memref<3x64x128xbf16, #tpu.memory_space<vmem>>, %arg3: memref<128x8xf32, #tpu.memory_space<vmem>>, %arg4: memref<32x128xbf16, #tpu.memory_space<vmem>>, %arg5: memref<1x2x8xf32, #tpu.memory_space<vmem>>) attributes {dimension_semantics = [#tpu.dimension_semantics<parallel>], iteration_bounds = array<i64: 1>, scalar_prefetch = 0 : i64, scratch_operands = 0 : i64, tpu.core_type = #tpu.core_type<tc>, window_params = [{transform_indices = @transform_0, window_bounds = array<i64: 32, 64>}, {pipeline_mode = #tpu.pipeline_mode<synchronous>, transform_indices = @transform_1, window_bounds = array<i64: 3, 64, 128>}, {pipeline_mode = #tpu.pipeline_mode<synchronous>, transform_indices = @transform_2, window_bounds = array<i64: 128, 8>}, {transform_indices = @transform_3, window_bounds = array<i64: 32, 128>}, {transform_indices = @transform_4, window_bounds = array<i64: 1, 2, 8>}]} {
    %c0 = arith.constant 0 : index
    %c0_0 = arith.constant 0 : index
    %0 = vector.load %arg1[%c0, %c0_0] : memref<32x64xbf16, #tpu.memory_space<vmem>>, vector<32x64xbf16>
    %c0_1 = arith.constant 0 : index
    %c0_2 = arith.constant 0 : index
    %c0_3 = arith.constant 0 : index
    %1 = vector.load %arg2[%c0_1, %c0_2, %c0_3] : memref<3x64x128xbf16, #tpu.memory_space<vmem>>, vector<1x64x128xbf16>
    %2 = vector.shape_cast %1 : vector<1x64x128xbf16> to vector<64x128xbf16>
    %cst = arith.constant dense<0.000000e+00> : vector<32x128xf32>
    %3 = tpu.matmul %0, %2, %cst {dimension_numbers = #tpu.dot_dimension_numbers<[1], [0], [0], [1], [0, 0, 1, 1], [], []>} : vector<32x64xbf16>, vector<64x128xbf16>, vector<32x128xf32> -> vector<32x128xf32>
    %c1 = arith.constant 1 : index
    %c0_4 = arith.constant 0 : index
    %c0_5 = arith.constant 0 : index
    %4 = vector.load %arg2[%c1, %c0_4, %c0_5] : memref<3x64x128xbf16, #tpu.memory_space<vmem>>, vector<1x64x128xbf16>
    %5 = vector.shape_cast %4 : vector<1x64x128xbf16> to vector<64x128xbf16>
    %cst_6 = arith.constant dense<0.000000e+00> : vector<32x128xf32>
    %6 = tpu.matmul %0, %5, %cst_6 {dimension_numbers = #tpu.dot_dimension_numbers<[1], [0], [0], [1], [0, 0, 1, 1], [], []>} : vector<32x64xbf16>, vector<64x128xbf16>, vector<32x128xf32> -> vector<32x128xf32>
    %c2 = arith.constant 2 : index
    %c0_7 = arith.constant 0 : index
    %c0_8 = arith.constant 0 : index
    %7 = vector.load %arg2[%c2, %c0_7, %c0_8] : memref<3x64x128xbf16, #tpu.memory_space<vmem>>, vector<1x64x128xbf16>
    %8 = vector.shape_cast %7 : vector<1x64x128xbf16> to vector<64x128xbf16>
    %cst_9 = arith.constant dense<0.000000e+00> : vector<32x128xf32>
    %9 = tpu.matmul %0, %8, %cst_9 {dimension_numbers = #tpu.dot_dimension_numbers<[1], [0], [0], [1], [0, 0, 1, 1], [], []>} : vector<32x64xbf16>, vector<64x128xbf16>, vector<32x128xf32> -> vector<32x128xf32>
    %10 = tpu.iota {dimensions = array<i32: 0>} : vector<32x128xi32>
    %c16_i32 = arith.constant 16 : i32
    %c0_i32 = arith.constant 0 : i32
    %11 = arith.cmpi eq, %c16_i32, %c0_i32 : i32
    %c1_i32 = arith.constant 1 : i32
    %12 = arith.select %11, %c1_i32, %c16_i32 : i32
    %13 = vector.broadcast %12 : i32 to vector<32x128xi32>
    %14 = arith.remsi %10, %13 : vector<32x128xi32>
    %c0_i32_10 = arith.constant 0 : i32
    %15 = vector.broadcast %c0_i32_10 : i32 to vector<32x128xi32>
    %16 = arith.cmpi ne, %14, %15 : vector<32x128xi32>
    %c0_i32_11 = arith.constant 0 : i32
    %17 = vector.broadcast %c0_i32_11 : i32 to vector<32x128xi32>
    %18 = arith.cmpi slt, %14, %17 : vector<32x128xi32>
    %c0_i32_12 = arith.constant 0 : i32
    %19 = arith.cmpi slt, %12, %c0_i32_12 : i32
    %20 = vector.broadcast %19 : i1 to vector<32x128xi1>
    %21 = vector.broadcast %20 : vector<32x128xi1> to vector<32x128xi1>
    %22 = arith.xori %18, %21 : vector<32x128xi1>
    %23 = arith.andi %22, %16 : vector<32x128xi1>
    %24 = vector.broadcast %12 : i32 to vector<32x128xi32>
    %25 = arith.addi %14, %24 : vector<32x128xi32>
    %26 = arith.select %23, %25, %14 : vector<32x128xi1>, vector<32x128xi32>
    %c0_i32_13 = arith.constant 0 : i32
    %27 = vector.broadcast %c0_i32_13 : i32 to vector<32x128xi32>
    %28 = arith.cmpi eq, %26, %27 : vector<32x128xi32>
    %c1_i32_14 = arith.constant 1 : i32
    %29 = tpu.dynamic_rotate %3 by %c1_i32_14 dim 0 : vector<32x128xf32>, i32 -> vector<32x128xf32>
    %cst_15 = arith.constant 0.000000e+00 : f32
    %30 = vector.broadcast %cst_15 : f32 to vector<32x128xf32>
    %31 = arith.select %28, %30, %29 : vector<32x128xi1>, vector<32x128xf32>
    %32 = arith.addf %6, %31 : vector<32x128xf32>
    %c15_i32 = arith.constant 15 : i32
    %33 = vector.broadcast %c15_i32 : i32 to vector<32x128xi32>
    %34 = arith.cmpi eq, %26, %33 : vector<32x128xi32>
    %c31_i32 = arith.constant 31 : i32
    %35 = tpu.dynamic_rotate %9 by %c31_i32 dim 0 : vector<32x128xf32>, i32 -> vector<32x128xf32>
    %cst_16 = arith.constant 0.000000e+00 : f32
    %36 = vector.broadcast %cst_16 : f32 to vector<32x128xf32>
    %37 = arith.select %34, %36, %35 : vector<32x128xi1>, vector<32x128xf32>
    %38 = arith.addf %32, %37 : vector<32x128xf32>
    %39 = arith.truncf %38 : vector<32x128xf32> to vector<32x128xbf16>
    %c0_17 = arith.constant 0 : index
    %c0_18 = arith.constant 0 : index
    %40 = vector.load %arg4[%c0_17, %c0_18] : memref<32x128xbf16, #tpu.memory_space<vmem>>, vector<32x128xbf16>
    tpu.vector_store %arg4[%c0_17, %c0_18], %39 {strides = array<i32>} : memref<32x128xbf16, #tpu.memory_space<vmem>>, vector<32x128xbf16>,
    %cst_19 = arith.constant dense<0.000000e+00> : vector<128xf32>
    %41 = vector.multi_reduction <add>, %38, %cst_19 [0] : vector<32x128xf32> to vector<128xf32>
    %42 = vector.shape_cast %41 : vector<128xf32> to vector<1x128xf32>
    %43 = arith.mulf %38, %38 : vector<32x128xf32>
    %cst_20 = arith.constant dense<0.000000e+00> : vector<128xf32>
    %44 = vector.multi_reduction <add>, %43, %cst_20 [0] : vector<32x128xf32> to vector<128xf32>
    %45 = vector.shape_cast %44 : vector<128xf32> to vector<1x128xf32>
    %46 = tpu.concatenate %42, %45 in 0 : vector<1x128xf32>, vector<1x128xf32> -> vector<2x128xf32>
    %c0_21 = arith.constant 0 : index
    %c0_22 = arith.constant 0 : index
    %47 = vector.load %arg3[%c0_21, %c0_22] : memref<128x8xf32, #tpu.memory_space<vmem>>, vector<128x8xf32>
    %cst_23 = arith.constant dense<0.000000e+00> : vector<2x8xf32>
    %48 = tpu.matmul %46, %47, %cst_23 {dimension_numbers = #tpu.dot_dimension_numbers<[1], [0], [0], [1], [0, 0, 1, 1], [], []>} : vector<2x128xf32>, vector<128x8xf32>, vector<2x8xf32> -> vector<2x8xf32>
    %49 = vector.shape_cast %48 : vector<2x8xf32> to vector<1x2x8xf32>
    %c0_24 = arith.constant 0 : index
    %c0_25 = arith.constant 0 : index
    %c0_26 = arith.constant 0 : index
    %50 = vector.load %arg5[%c0_24, %c0_25, %c0_26] : memref<1x2x8xf32, #tpu.memory_space<vmem>>, vector<1x2x8xf32>
    tpu.vector_store %arg5[%c0_24, %c0_25, %c0_26], %49 {strides = array<i32>} : memref<1x2x8xf32, #tpu.memory_space<vmem>>, vector<1x2x8xf32>,
    return
  }
  func.func @transform_0(%arg0: i32) -> (i32, i32) {
    %c0_i32 = arith.constant 0 : i32
    %c0_i32_0 = arith.constant 0 : i32
    return %arg0, %c0_i32 : i32, i32
  }
  func.func @transform_1(%arg0: i32) -> (i32, i32, i32) {
    %c0_i32 = arith.constant 0 : i32
    %c0_i32_0 = arith.constant 0 : i32
    %c0_i32_1 = arith.constant 0 : i32
    %c0_i32_2 = arith.constant 0 : i32
    return %c0_i32, %c0_i32_0, %c0_i32_1 : i32, i32, i32
  }
  func.func @transform_2(%arg0: i32) -> (i32, i32) {
    %c0_i32 = arith.constant 0 : i32
    %c0_i32_0 = arith.constant 0 : i32
    %c0_i32_1 = arith.constant 0 : i32
    return %c0_i32, %c0_i32_0 : i32, i32
  }
  func.func @transform_3(%arg0: i32) -> (i32, i32) {
    %c0_i32 = arith.constant 0 : i32
    %c0_i32_0 = arith.constant 0 : i32
    return %arg0, %c0_i32 : i32, i32
  }
  func.func @transform_4(%arg0: i32) -> (i32, i32, i32) {
    %c0_i32 = arith.constant 0 : i32
    %c0_i32_0 = arith.constant 0 : i32
    %c0_i32_1 = arith.constant 0 : i32
    return %arg0, %c0_i32, %c0_i32_0 : i32, i32, i32
  }
}

module attributes {stable_mosaic.version = 11 : i64} {
  func.func @bn_relu_conv2_stats_kernel(%arg0: i32, %arg1: memref<32x128xbf16, #tpu.memory_space<vmem>>, %arg2: memref<1x128xf32, #tpu.memory_space<vmem>>, %arg3: memref<1x128xf32, #tpu.memory_space<vmem>>, %arg4: memref<3x128x128xbf16, #tpu.memory_space<vmem>>, %arg5: memref<128x8xf32, #tpu.memory_space<vmem>>, %arg6: memref<32x128xbf16, #tpu.memory_space<vmem>>, %arg7: memref<1x2x8xf32, #tpu.memory_space<vmem>>) attributes {dimension_semantics = [#tpu.dimension_semantics<parallel>], iteration_bounds = array<i64: 1>, scalar_prefetch = 0 : i64, scratch_operands = 0 : i64, tpu.core_type = #tpu.core_type<tc>, window_params = [{transform_indices = @transform_0, window_bounds = array<i64: 32, 128>}, {pipeline_mode = #tpu.pipeline_mode<synchronous>, transform_indices = @transform_1, window_bounds = array<i64: 1, 128>}, {pipeline_mode = #tpu.pipeline_mode<synchronous>, transform_indices = @transform_2, window_bounds = array<i64: 1, 128>}, {pipeline_mode = #tpu.pipeline_mode<synchronous>, transform_indices = @transform_3, window_bounds = array<i64: 3, 128, 128>}, {pipeline_mode = #tpu.pipeline_mode<synchronous>, transform_indices = @transform_4, window_bounds = array<i64: 128, 8>}, {transform_indices = @transform_5, window_bounds = array<i64: 32, 128>}, {transform_indices = @transform_6, window_bounds = array<i64: 1, 2, 8>}]} {
    %c0 = arith.constant 0 : index
    %c0_0 = arith.constant 0 : index
    %0 = vector.load %arg1[%c0, %c0_0] : memref<32x128xbf16, #tpu.memory_space<vmem>>, vector<32x128xbf16>
    %1 = arith.extf %0 : vector<32x128xbf16> to vector<32x128xf32>
    %c0_1 = arith.constant 0 : index
    %c0_2 = arith.constant 0 : index
    %2 = vector.load %arg2[%c0_1, %c0_2] : memref<1x128xf32, #tpu.memory_space<vmem>>, vector<1x128xf32>
    %3 = vector.broadcast %2 : vector<1x128xf32> to vector<32x128xf32>
    %4 = arith.mulf %1, %3 : vector<32x128xf32>
    %c0_3 = arith.constant 0 : index
    %c0_4 = arith.constant 0 : index
    %5 = vector.load %arg3[%c0_3, %c0_4] : memref<1x128xf32, #tpu.memory_space<vmem>>, vector<1x128xf32>
    %6 = vector.broadcast %5 : vector<1x128xf32> to vector<32x128xf32>
    %7 = arith.addf %4, %6 : vector<32x128xf32>
    %cst = arith.constant 0.000000e+00 : f32
    %8 = vector.broadcast %cst : f32 to vector<32x128xf32>
    %9 = arith.maximumf %7, %8 : vector<32x128xf32>
    %10 = arith.truncf %9 : vector<32x128xf32> to vector<32x128xbf16>
    %c0_5 = arith.constant 0 : index
    %c0_6 = arith.constant 0 : index
    %c0_7 = arith.constant 0 : index
    %11 = vector.load %arg4[%c0_5, %c0_6, %c0_7] : memref<3x128x128xbf16, #tpu.memory_space<vmem>>, vector<1x128x128xbf16>
    %12 = vector.shape_cast %11 : vector<1x128x128xbf16> to vector<128x128xbf16>
    %cst_8 = arith.constant dense<0.000000e+00> : vector<32x128xf32>
    %13 = tpu.matmul %10, %12, %cst_8 {dimension_numbers = #tpu.dot_dimension_numbers<[1], [0], [0], [1], [0, 0, 1, 1], [], []>} : vector<32x128xbf16>, vector<128x128xbf16>, vector<32x128xf32> -> vector<32x128xf32>
    %c1 = arith.constant 1 : index
    %c0_9 = arith.constant 0 : index
    %c0_10 = arith.constant 0 : index
    %14 = vector.load %arg4[%c1, %c0_9, %c0_10] : memref<3x128x128xbf16, #tpu.memory_space<vmem>>, vector<1x128x128xbf16>
    %15 = vector.shape_cast %14 : vector<1x128x128xbf16> to vector<128x128xbf16>
    %cst_11 = arith.constant dense<0.000000e+00> : vector<32x128xf32>
    %16 = tpu.matmul %10, %15, %cst_11 {dimension_numbers = #tpu.dot_dimension_numbers<[1], [0], [0], [1], [0, 0, 1, 1], [], []>} : vector<32x128xbf16>, vector<128x128xbf16>, vector<32x128xf32> -> vector<32x128xf32>
    %c2 = arith.constant 2 : index
    %c0_12 = arith.constant 0 : index
    %c0_13 = arith.constant 0 : index
    %17 = vector.load %arg4[%c2, %c0_12, %c0_13] : memref<3x128x128xbf16, #tpu.memory_space<vmem>>, vector<1x128x128xbf16>
    %18 = vector.shape_cast %17 : vector<1x128x128xbf16> to vector<128x128xbf16>
    %cst_14 = arith.constant dense<0.000000e+00> : vector<32x128xf32>
    %19 = tpu.matmul %10, %18, %cst_14 {dimension_numbers = #tpu.dot_dimension_numbers<[1], [0], [0], [1], [0, 0, 1, 1], [], []>} : vector<32x128xbf16>, vector<128x128xbf16>, vector<32x128xf32> -> vector<32x128xf32>
    %20 = tpu.iota {dimensions = array<i32: 0>} : vector<32x128xi32>
    %c16_i32 = arith.constant 16 : i32
    %c0_i32 = arith.constant 0 : i32
    %21 = arith.cmpi eq, %c16_i32, %c0_i32 : i32
    %c1_i32 = arith.constant 1 : i32
    %22 = arith.select %21, %c1_i32, %c16_i32 : i32
    %23 = vector.broadcast %22 : i32 to vector<32x128xi32>
    %24 = arith.remsi %20, %23 : vector<32x128xi32>
    %c0_i32_15 = arith.constant 0 : i32
    %25 = vector.broadcast %c0_i32_15 : i32 to vector<32x128xi32>
    %26 = arith.cmpi ne, %24, %25 : vector<32x128xi32>
    %c0_i32_16 = arith.constant 0 : i32
    %27 = vector.broadcast %c0_i32_16 : i32 to vector<32x128xi32>
    %28 = arith.cmpi slt, %24, %27 : vector<32x128xi32>
    %c0_i32_17 = arith.constant 0 : i32
    %29 = arith.cmpi slt, %22, %c0_i32_17 : i32
    %30 = vector.broadcast %29 : i1 to vector<32x128xi1>
    %31 = vector.broadcast %30 : vector<32x128xi1> to vector<32x128xi1>
    %32 = arith.xori %28, %31 : vector<32x128xi1>
    %33 = arith.andi %32, %26 : vector<32x128xi1>
    %34 = vector.broadcast %22 : i32 to vector<32x128xi32>
    %35 = arith.addi %24, %34 : vector<32x128xi32>
    %36 = arith.select %33, %35, %24 : vector<32x128xi1>, vector<32x128xi32>
    %c0_i32_18 = arith.constant 0 : i32
    %37 = vector.broadcast %c0_i32_18 : i32 to vector<32x128xi32>
    %38 = arith.cmpi eq, %36, %37 : vector<32x128xi32>
    %c1_i32_19 = arith.constant 1 : i32
    %39 = tpu.dynamic_rotate %13 by %c1_i32_19 dim 0 : vector<32x128xf32>, i32 -> vector<32x128xf32>
    %cst_20 = arith.constant 0.000000e+00 : f32
    %40 = vector.broadcast %cst_20 : f32 to vector<32x128xf32>
    %41 = arith.select %38, %40, %39 : vector<32x128xi1>, vector<32x128xf32>
    %42 = arith.addf %16, %41 : vector<32x128xf32>
    %c15_i32 = arith.constant 15 : i32
    %43 = vector.broadcast %c15_i32 : i32 to vector<32x128xi32>
    %44 = arith.cmpi eq, %36, %43 : vector<32x128xi32>
    %c31_i32 = arith.constant 31 : i32
    %45 = tpu.dynamic_rotate %19 by %c31_i32 dim 0 : vector<32x128xf32>, i32 -> vector<32x128xf32>
    %cst_21 = arith.constant 0.000000e+00 : f32
    %46 = vector.broadcast %cst_21 : f32 to vector<32x128xf32>
    %47 = arith.select %44, %46, %45 : vector<32x128xi1>, vector<32x128xf32>
    %48 = arith.addf %42, %47 : vector<32x128xf32>
    %49 = arith.truncf %48 : vector<32x128xf32> to vector<32x128xbf16>
    %c0_22 = arith.constant 0 : index
    %c0_23 = arith.constant 0 : index
    %50 = vector.load %arg6[%c0_22, %c0_23] : memref<32x128xbf16, #tpu.memory_space<vmem>>, vector<32x128xbf16>
    tpu.vector_store %arg6[%c0_22, %c0_23], %49 {strides = array<i32>} : memref<32x128xbf16, #tpu.memory_space<vmem>>, vector<32x128xbf16>,
    %cst_24 = arith.constant dense<0.000000e+00> : vector<128xf32>
    %51 = vector.multi_reduction <add>, %48, %cst_24 [0] : vector<32x128xf32> to vector<128xf32>
    %52 = vector.shape_cast %51 : vector<128xf32> to vector<1x128xf32>
    %53 = arith.mulf %48, %48 : vector<32x128xf32>
    %cst_25 = arith.constant dense<0.000000e+00> : vector<128xf32>
    %54 = vector.multi_reduction <add>, %53, %cst_25 [0] : vector<32x128xf32> to vector<128xf32>
    %55 = vector.shape_cast %54 : vector<128xf32> to vector<1x128xf32>
    %56 = tpu.concatenate %52, %55 in 0 : vector<1x128xf32>, vector<1x128xf32> -> vector<2x128xf32>
    %c0_26 = arith.constant 0 : index
    %c0_27 = arith.constant 0 : index
    %57 = vector.load %arg5[%c0_26, %c0_27] : memref<128x8xf32, #tpu.memory_space<vmem>>, vector<128x8xf32>
    %cst_28 = arith.constant dense<0.000000e+00> : vector<2x8xf32>
    %58 = tpu.matmul %56, %57, %cst_28 {dimension_numbers = #tpu.dot_dimension_numbers<[1], [0], [0], [1], [0, 0, 1, 1], [], []>} : vector<2x128xf32>, vector<128x8xf32>, vector<2x8xf32> -> vector<2x8xf32>
    %59 = vector.shape_cast %58 : vector<2x8xf32> to vector<1x2x8xf32>
    %c0_29 = arith.constant 0 : index
    %c0_30 = arith.constant 0 : index
    %c0_31 = arith.constant 0 : index
    %60 = vector.load %arg7[%c0_29, %c0_30, %c0_31] : memref<1x2x8xf32, #tpu.memory_space<vmem>>, vector<1x2x8xf32>
    tpu.vector_store %arg7[%c0_29, %c0_30, %c0_31], %59 {strides = array<i32>} : memref<1x2x8xf32, #tpu.memory_space<vmem>>, vector<1x2x8xf32>,
    return
  }
  func.func @transform_0(%arg0: i32) -> (i32, i32) {
    %c0_i32 = arith.constant 0 : i32
    %c0_i32_0 = arith.constant 0 : i32
    return %arg0, %c0_i32 : i32, i32
  }
  func.func @transform_1(%arg0: i32) -> (i32, i32) {
    %c0_i32 = arith.constant 0 : i32
    %c0_i32_0 = arith.constant 0 : i32
    %c0_i32_1 = arith.constant 0 : i32
    return %c0_i32, %c0_i32_0 : i32, i32
  }
  func.func @transform_2(%arg0: i32) -> (i32, i32) {
    %c0_i32 = arith.constant 0 : i32
    %c0_i32_0 = arith.constant 0 : i32
    %c0_i32_1 = arith.constant 0 : i32
    return %c0_i32, %c0_i32_0 : i32, i32
  }
  func.func @transform_3(%arg0: i32) -> (i32, i32, i32) {
    %c0_i32 = arith.constant 0 : i32
    %c0_i32_0 = arith.constant 0 : i32
    %c0_i32_1 = arith.constant 0 : i32
    %c0_i32_2 = arith.constant 0 : i32
    return %c0_i32, %c0_i32_0, %c0_i32_1 : i32, i32, i32
  }
  func.func @transform_4(%arg0: i32) -> (i32, i32) {
    %c0_i32 = arith.constant 0 : i32
    %c0_i32_0 = arith.constant 0 : i32
    %c0_i32_1 = arith.constant 0 : i32
    return %c0_i32, %c0_i32_0 : i32, i32
  }
  func.func @transform_5(%arg0: i32) -> (i32, i32) {
    %c0_i32 = arith.constant 0 : i32
    %c0_i32_0 = arith.constant 0 : i32
    return %arg0, %c0_i32 : i32, i32
  }
  func.func @transform_6(%arg0: i32) -> (i32, i32, i32) {
    %c0_i32 = arith.constant 0 : i32
    %c0_i32_0 = arith.constant 0 : i32
    %c0_i32_1 = arith.constant 0 : i32
    return %arg0, %c0_i32, %c0_i32_0 : i32, i32, i32
  }
}

module attributes {stable_mosaic.version = 11 : i64} {
  func.func @bn_relu_kernel(%arg0: i32, %arg1: memref<32x128xbf16, #tpu.memory_space<vmem>>, %arg2: memref<1x128xf32, #tpu.memory_space<vmem>>, %arg3: memref<1x128xf32, #tpu.memory_space<vmem>>, %arg4: memref<32x128xf32, #tpu.memory_space<vmem>>) attributes {dimension_semantics = [#tpu.dimension_semantics<parallel>], iteration_bounds = array<i64: 1>, scalar_prefetch = 0 : i64, scratch_operands = 0 : i64, tpu.core_type = #tpu.core_type<tc>, window_params = [{transform_indices = @transform_0, window_bounds = array<i64: 32, 128>}, {pipeline_mode = #tpu.pipeline_mode<synchronous>, transform_indices = @transform_1, window_bounds = array<i64: 1, 128>}, {pipeline_mode = #tpu.pipeline_mode<synchronous>, transform_indices = @transform_2, window_bounds = array<i64: 1, 128>}, {transform_indices = @transform_3, window_bounds = array<i64: 32, 128>}]} {
    %c0 = arith.constant 0 : index
    %c0_0 = arith.constant 0 : index
    %0 = vector.load %arg1[%c0, %c0_0] : memref<32x128xbf16, #tpu.memory_space<vmem>>, vector<32x128xbf16>
    %1 = arith.extf %0 : vector<32x128xbf16> to vector<32x128xf32>
    %c0_1 = arith.constant 0 : index
    %c0_2 = arith.constant 0 : index
    %2 = vector.load %arg2[%c0_1, %c0_2] : memref<1x128xf32, #tpu.memory_space<vmem>>, vector<1x128xf32>
    %3 = vector.broadcast %2 : vector<1x128xf32> to vector<32x128xf32>
    %4 = arith.mulf %1, %3 : vector<32x128xf32>
    %c0_3 = arith.constant 0 : index
    %c0_4 = arith.constant 0 : index
    %5 = vector.load %arg3[%c0_3, %c0_4] : memref<1x128xf32, #tpu.memory_space<vmem>>, vector<1x128xf32>
    %6 = vector.broadcast %5 : vector<1x128xf32> to vector<32x128xf32>
    %7 = arith.addf %4, %6 : vector<32x128xf32>
    %cst = arith.constant 0.000000e+00 : f32
    %8 = vector.broadcast %cst : f32 to vector<32x128xf32>
    %9 = arith.maximumf %7, %8 : vector<32x128xf32>
    %c0_5 = arith.constant 0 : index
    %c0_6 = arith.constant 0 : index
    %10 = vector.load %arg4[%c0_5, %c0_6] : memref<32x128xf32, #tpu.memory_space<vmem>>, vector<32x128xf32>
    tpu.vector_store %arg4[%c0_5, %c0_6], %9 {strides = array<i32>} : memref<32x128xf32, #tpu.memory_space<vmem>>, vector<32x128xf32>,
    return
  }
  func.func @transform_0(%arg0: i32) -> (i32, i32) {
    %c0_i32 = arith.constant 0 : i32
    %c0_i32_0 = arith.constant 0 : i32
    return %arg0, %c0_i32 : i32, i32
  }
  func.func @transform_1(%arg0: i32) -> (i32, i32) {
    %c0_i32 = arith.constant 0 : i32
    %c0_i32_0 = arith.constant 0 : i32
    %c0_i32_1 = arith.constant 0 : i32
    return %c0_i32, %c0_i32_0 : i32, i32
  }
  func.func @transform_2(%arg0: i32) -> (i32, i32) {
    %c0_i32 = arith.constant 0 : i32
    %c0_i32_0 = arith.constant 0 : i32
    %c0_i32_1 = arith.constant 0 : i32
    return %c0_i32, %c0_i32_0 : i32, i32
  }
  func.func @transform_3(%arg0: i32) -> (i32, i32) {
    %c0_i32 = arith.constant 0 : i32
    %c0_i32_0 = arith.constant 0 : i32
    return %arg0, %c0_i32 : i32, i32
  }
}

</mosaic_0001>

<bundles_post_ra>
// kernel: tile.48
= control target key start
LH: loop header
LB: loop body
LE: loop exit
PB: predicated region body
PF: predicated region fallthrough
CT: control target
= control target key end

     0   :  { %s28_s0 = inlined_call_operand.vmem [shape: f32[8], index: 0, kind: input, shape index: {}]   ;;  %s29_s1 = inlined_call_operand.vmem [shape: f32[16,8], index: 1, kind: output, shape index: {}]  }
   0x1   :  { %v4_v0 = vld [vmem:[%s28_s0] ss:$0 sm:$0xff] }
   0x2   :  { %5 = vst [vmem:[%s29_s1] sm:$0xff] %v4_v0  ;;  %8 = vst [vmem:[%s29_s1 + $0x8] sm:$0xff] %v4_v0 }

// kernel: tile.49
= control target key start
LH: loop header
LB: loop body
LE: loop exit
PB: predicated region body
PF: predicated region fallthrough
CT: control target
= control target key end

     0   :  { %s131_s10 = smov 120   ;;  %s132_s11 = smov 104   ;;  %vm3_vm0 = vcmask 64512   ;;  %vm9_vm1 = vcmask 1048512   ;;  %vm15_vm2 = vcmask 982912   ;;  %vm21_vm3 = vcmask 917312   ;;  %s207_s0 = inlined_call_operand.vmem [shape: f32[16,8], index: 0, kind: input, shape index: {}]   ;;  %s208_s1 = inlined_call_operand.vmem [shape: f32[1,128], index: 1, kind: output, shape index: {}]  }
   0x1   :  { %v101_v0 = vld [vmem:[%s207_s0 + $0xf] sm:$0x1]   ;;  %v103_v1 = vld [vmem:[%s207_s0 + $0xd] sm:$0x1]   ;;  %v102_v2 = vld [vmem:[%s207_s0 + $0xe] sm:$0x1]  }
   0x2   :  { %7 = vrot.lane.b32.xlu0 %v101_v0, %s131_s10  ;;  %19 = vrot.lane.b32.xlu1 %v103_v1, %s132_s11  ;;  %v104_v3 = vld [vmem:[%s207_s0 + $0xc] sm:$0x1]   ;;  %s133_s16 = smov 112   ;;  %s134_s17 = smov 96   ;;  %v105_v4 = vld [vmem:[%s207_s0 + $0xb] sm:$0x1]  }
   0x3   :  { %v106_v5 = vld [vmem:[%s207_s0 + $0xa] sm:$0x1]   ;;  %v2_v6 = vld [vmem:[%s207_s0] sm:$0x1]   ;;  %s135_s24 = smov 88   ;;  %s136_s25 = smov 80  }
   0x4   :  { %4 = vst.msk [vmem:[#allocation0] sm:$0x1] %vm3_vm0, %v2_v6   ;;  %v107_v7 = vld [vmem:[%s207_s0 + $0x9] sm:$0x1]   ;;  %v108_v8 = vld [vmem:[%s207_s0 + $0x8] sm:$0x1]  }
   0x5   :  { %s137_s30 = smov 72   ;;  %s138_s2 = smov 64   ;;  %v109_v9 = vld [vmem:[%s207_s0 + $0x7] sm:$0x1]   ;;  %v110_v10 = vld [vmem:[%s207_s0 + $0x6] sm:$0x1]  }
   0x6   :  { %13 = vrot.lane.b32.xlu0 %v102_v2, %s133_s16  ;;  %25 = vrot.lane.b32.xlu1 %v104_v3, %s134_s17  ;;  %s139_s7 = smov 56   ;;  %s140_s8 = smov 48   ;;  %v111_v11 = vld [vmem:[%s207_s0 + $0x5] sm:$0x1]   ;;  %v112_v12 = vld [vmem:[%s207_s0 + $0x4] sm:$0x1]  }
   0x7   :  { %s141_s13 = smov 40   ;;  %s142_s14 = smov 32   ;;  %v113_v13 = vld [vmem:[%s207_s0 + $0x3] sm:$0x1]   ;;  %v114_v14 = vld [vmem:[%s207_s0 + $0x2] sm:$0x1]  }
   0x8   :  { %s143_s19 = smov 24   ;;  %s144_s20 = smov 16   ;;  %v115_v15 = vld [vmem:[%s207_s0 + $0x1] sm:$0x1]   ;;  %vm27_vm4 = vcmask 851712   ;;  %vm33_vm5 = vcmask 786112  }
   0x9   :  { %s145_s0 = smov 8   ;;  %vm39_vm6 = vcmask 720512   ;;  %vm45_vm7 = vcmask 654912   ;;  %vm51_vm8 = vcmask 589312   ;;  %vm57_vm9 = vcmask 523712  }
   0xa   :  { %31 = vrot.lane.b32.xlu0 %v105_v4, %s135_s24  ;;  %37 = vrot.lane.b32.xlu1 %v106_v5, %s136_s25  ;;  %vm63_vm10 = vcmask 458112   ;;  %vm69_vm11 = vcmask 392512   ;;  %vm75_vm12 = vcmask 326912   ;;  %vm81_vm13 = vcmask 261312  }
   0xb   :  { %vm87_vm14 = vcmask 195712   ;;  %vm93_vm15 = vcmask 130112  }
   0xe   :  { %43 = vrot.lane.b32.xlu0 %v107_v7, %s137_s30  ;;  %49 = vrot.lane.b32.xlu1 %v108_v8, %s138_s2 }
  0x12   :  { %55 = vrot.lane.b32.xlu0 %v109_v9, %s139_s7  ;;  %61 = vrot.lane.b32.xlu1 %v110_v10, %s140_s8 }
  0x16   :  { %67 = vrot.lane.b32.xlu0 %v111_v11, %s141_s13  ;;  %73 = vrot.lane.b32.xlu1 %v112_v12, %s142_s14 }
  0x1a   :  { %79 = vrot.lane.b32.xlu0 %v113_v13, %s143_s19  ;;  %85 = vrot.lane.b32.xlu1 %v114_v14, %s144_s20 }
  0x1e   :  { %91 = vrot.lane.b32.xlu0 %v115_v15, %s145_s0 }
  0x74   :  { %v8_v16 = vpop.permute.xlu0 %7   ;;  %v20_v17 = vpop.permute.xlu1 %19  }
  0x75   :  { %10 = vst.msk [vmem:[#allocation0] sm:$0x1] %vm9_vm1, %v8_v16  }
  0x78   :  { %v14_v18 = vpop.permute.xlu0 %13   ;;  %v26_v19 = vpop.permute.xlu1 %25  }
  0x79   :  { %16 = vst.msk [vmem:[#allocation0] sm:$0x1] %vm15_vm2, %v14_v18  }
  0x7a   :  { %22 = vst.msk [vmem:[#allocation0] sm:$0x1] %vm21_vm3, %v20_v17  }
  0x7b   :  { %28 = vst.msk [vmem:[#allocation0] sm:$0x1] %vm27_vm4, %v26_v19  }
  0x7c   :  { %v32_v20 = vpop.permute.xlu0 %31   ;;  %v38_v21 = vpop.permute.xlu1 %37  }
  0x7d   :  { %34 = vst.msk [vmem:[#allocation0] sm:$0x1] %vm33_vm5, %v32_v20  }
  0x7e   :  { %40 = vst.msk [vmem:[#allocation0] sm:$0x1] %vm39_vm6, %v38_v21  }
  0x80   :  { %v44_v22 = vpop.permute.xlu0 %43   ;;  %v50_v23 = vpop.permute.xlu1 %49  }
  0x81   :  { %46 = vst.msk [vmem:[#allocation0] sm:$0x1] %vm45_vm7, %v44_v22  }
  0x82   :  { %52 = vst.msk [vmem:[#allocation0] sm:$0x1] %vm51_vm8, %v50_v23  }
  0x84   :  { %v56_v24 = vpop.permute.xlu0 %55   ;;  %v62_v25 = vpop.permute.xlu1 %61  }
  0x85   :  { %58 = vst.msk [vmem:[#allocation0] sm:$0x1] %vm57_vm9, %v56_v24  }
  0x86   :  { %64 = vst.msk [vmem:[#allocation0] sm:$0x1] %vm63_vm10, %v62_v25  }
  0x88   :  { %v68_v26 = vpop.permute.xlu0 %67   ;;  %v74_v27 = vpop.permute.xlu1 %73  }
  0x89   :  { %70 = vst.msk [vmem:[#allocation0] sm:$0x1] %vm69_vm11, %v68_v26  }
  0x8a   :  { %76 = vst.msk [vmem:[#allocation0] sm:$0x1] %vm75_vm12, %v74_v27  }
  0x8c   :  { %v80_v28 = vpop.permute.xlu0 %79   ;;  %v86_v29 = vpop.permute.xlu1 %85  }
  0x8d   :  { %82 = vst.msk [vmem:[#allocation0] sm:$0x1] %vm81_vm13, %v80_v28  }
  0x8e   :  { %88 = vst.msk [vmem:[#allocation0] sm:$0x1] %vm87_vm14, %v86_v29  }
  0x90   :  { %v92_v30 = vpop.permute.xlu0 %91  }
  0x91   :  { %94 = vst.msk [vmem:[#allocation0] sm:$0x1] %vm93_vm15, %v92_v30  }
  0x98   :  { %v98_v31 = vld [vmem:[#allocation0] sm:$0x1] }
  0x99   :  { %100 = vst [vmem:[%s208_s1] sm:$0x1] %v98_v31 }

// kernel: double_conv.3
= control target key start
LH: loop header
LB: loop body
LE: loop exit
PB: predicated region body
PF: predicated region fallthrough
CT: control target
= control target key end

     0   :  { %vm63_vm0 = vcmask 523264   ;;  %v716_v14 = vmov 0.0|0.0   ;;  %vm717_vm1 = vmmov 0   ;;  %v718_v35 = vmov 0.0   ;;  %s853_s1 = inlined_call_operand.vmem [shape: bf16[3,64,128], index: 1, kind: input, shape index: {}]   ;;  %s854_s0 = inlined_call_operand.vmem [shape: bf16[32,64], index: 0, kind: input, shape index: {}]   ;;  %s855_s2 = inlined_call_operand.vmem [shape: f32[128,8], index: 2, kind: input, shape index: {}]   ;;  %s856_s3 = inlined_call_operand.vmem [shape: bf16[32,128], index: 3, kind: output, shape index: {0}]   ;;  %s857_s4 = inlined_call_operand.vmem [shape: f32[1,2,8], index: 4, kind: output, shape index: {1}]  }
   0x1   :  { %v702_v0 = vld [vmem:[%s853_s1] sm:$0xff]   ;;  %v703_v1 = vld [vmem:[%s853_s1 + $0x8] sm:$0xff]   ;;  %v704_v3 = vld [vmem:[%s853_s1 + $0x10] sm:$0xff]   ;;  %v210_v40 = vlaneseq  ;;  %vm416_vm8 = vcmask 1040384   ;;  %vm504_vm9 = vcmask 58368  }
   0x2   :  { %604 = vmatprep.subr.bf16.mxu0 %v702_v0  ;;  %v705_v2 = vld [vmem:[%s853_s1 + $0x40] sm:$0xff]   ;;  %v708_v5 = vld [vmem:[%s853_s1 + $0x48] sm:$0xff]   ;;  %v706_v6 = vld [vmem:[%s853_s1 + $0x18] sm:$0xff]  }
   0x3   :  { %605 = vmatpush3.bf16.msra.mxu0 %v702_v0  ;;  %616 = vmatprep.subr.bf16.mxu1 %v705_v2  ;;  %v707_v4 = vld [vmem:[%s854_s0] sm:$0xff]   ;;  %v711_v7 = vld [vmem:[%s853_s1 + $0x50] sm:$0xff]   ;;  %v713_v8 = vld [vmem:[%s853_s1 + $0x58] sm:$0xff]   ;;  %v211_v42 = vshrl.u32 %v210_v40, 7 }
   0x4   :  { %606 = vmatprep.subr.bf16.mxu0 %v703_v1  ;;  %617 = vmatpush3.bf16.msra.mxu1 %v705_v2  ;;  %v710_v9 = vld [vmem:[%s853_s1 + $0x20] sm:$0xff]   ;;  %v709_v10 = vld [vmem:[%s854_s0 + $0x8] sm:$0xff]   ;;  %v714_v12 = vld [vmem:[%s853_s1 + $0x30] sm:$0xff]  }
   0x5   :  { %612 = vmatprep.mubr.msk.bf16.mxu0 %vm63_vm0, %v707_v4  ;;  %618 = vmatprep.subr.bf16.mxu1 %v708_v5  ;;  %v712_v11 = vld [vmem:[%s853_s1 + $0x28] sm:$0xff]   ;;  %v715_v13 = vld [vmem:[%s853_s1 + $0x38] sm:$0xff]   ;;  %v418_v15 = vld [vmem:[%s855_s2] sm:$0xff]  ;;  %vm271_vm2 = vcmp.lt.s32.totalorder %v211_v42, 1  ;;  %v213_v53 = vadd.s32 16, %v211_v42  ;;  %vm361_vm3 = vcmp.lt.s32.totalorder %v211_v42, 7 }
   0x6   :  { %624 = vmatprep.mubr.msk.bf16.mxu1 %vm63_vm0, %v707_v4  ;;  %v419_v16 = vld [vmem:[%s855_s2 + $0x8] sm:$0xff]  ;;  %v420_v18 = vld [vmem:[%s855_s2 + $0x10] sm:$0xff]  ;;  %v421_v19 = vld [vmem:[%s855_s2 + $0x18] sm:$0xff] }
   0x7   :  { %607 = vmatpush3.bf16.msra.mxu0 %v703_v1  ;;  %v676_v17 = vpack.c.bf16 %v419_v16, %v418_v15  ;;  %v679_v20 = vpack.c.bf16 %v421_v19, %v420_v18  ;;  %v422_v21 = vld [vmem:[%s855_s2 + $0x20] sm:$0xff]  ;;  %v423_v22 = vld [vmem:[%s855_s2 + $0x28] sm:$0xff]  ;;  %v424_v24 = vld [vmem:[%s855_s2 + $0x30] sm:$0xff]  ;;  %v233_v1 = vand.u32 15, %v213_v53 }
   0x8   :  { %608 = vmatprep.subr.bf16.mxu0 %v704_v3  ;;  %619 = vmatpush3.bf16.msra.mxu1 %v708_v5  ;;  %v682_v23 = vpack.c.bf16 %v423_v22, %v422_v21  ;;  %v425_v25 = vld [vmem:[%s855_s2 + $0x38] sm:$0xff]  ;;  %v426_v27 = vld [vmem:[%s855_s2 + $0x40] sm:$0xff]  ;;  %v427_v28 = vld [vmem:[%s855_s2 + $0x48] sm:$0xff]  ;;  %v219_v5 = vand.u32 15, %v211_v42 }
   0x9   :  { %620 = vmatprep.subr.bf16.mxu1 %v711_v7  ;;  %v685_v26 = vpack.c.bf16 %v425_v25, %v424_v24  ;;  %v688_v29 = vpack.c.bf16 %v427_v28, %v426_v27  ;;  %v428_v30 = vld [vmem:[%s855_s2 + $0x50] sm:$0xff]  ;;  %v429_v31 = vld [vmem:[%s855_s2 + $0x58] sm:$0xff]  ;;  %v430_v33 = vld [vmem:[%s855_s2 + $0x60] sm:$0xff]  ;;  %vm265_vm4 = vcmp.eq.s32.totalorder %v233_v1, 0 }
   0xa   :  { %v691_v32 = vpack.c.bf16 %v429_v31, %v428_v30  ;;  %v431_v34 = vld [vmem:[%s855_s2 + $0x68] sm:$0xff]  ;;  %v432_v37 = vld [vmem:[%s855_s2 + $0x70] sm:$0xff]  ;;  %v433_v38 = vld [vmem:[%s855_s2 + $0x78] sm:$0xff]  ;;  %vm263_vm5 = vcmp.eq.s32.totalorder %v219_v5, 0 }
   0xb   :  { %609 = vmatpush3.bf16.msra.mxu0 %v704_v3  ;;  %v694_v36 = vpack.c.bf16 %v431_v34, %v430_v33  ;;  %v697_v39 = vpack.c.bf16 %v433_v38, %v432_v37  ;;  %v214_v3 = vadd.s32 24, %v211_v42 }
   0xc   :  { %610 = vmatprep.subr.bf16.mxu0 %v706_v6  ;;  %621 = vmatpush3.bf16.msra.mxu1 %v711_v7 }
   0xd   :  { %622 = vmatprep.subr.bf16.mxu1 %v713_v8  ;;  %v240_v7 = vand.u32 15, %v214_v3 }
   0xf   :  { %611 = vmatpush3.bf16.msra.mxu0 %v706_v6  ;;  %v212_v6 = vadd.s32 8, %v211_v42  ;;  %vm356_vm6 = vcmp.eq.s32.totalorder %v240_v7, 15 }
  0x10   :  { %628 = vmatprep.subr.bf16.mxu0 %v710_v9  ;;  %623 = vmatpush3.bf16.msra.mxu1 %v713_v8 }
  0x11   :  { %675 = vmatprep.subr.bf16.mxu1 %v716_v14  ;;  %v226_v8 = vand.u32 15, %v212_v6 }
  0x12   :  { %613 = vmatmul.mubr.msk.bf16.vlgmr.msra.gmra.mrb[0].mxu0 %vm63_vm0, %v709_v10 }
  0x13   :  { %629 = vmatpush3.bf16.msra.mxu0 %v710_v9  ;;  %636 = vmatprep.mubr.msk.bf16.mxu0 %vm63_vm0, %v707_v4  ;;  %vm354_vm7 = vcmp.eq.s32.totalorder %v226_v8, 15 }
  0x14   :  { %630 = vmatprep.subr.bf16.mxu0 %v712_v11  ;;  %625 = vmatmul.mubr.msk.bf16.vlgmr.msra.gmra.mrb[0].mxu1 %vm63_vm0, %v709_v10 }
  0x15   :  { %677 = vmatpush3.bf16.msra.mxu1 %v676_v17  ;;  %672 = vmatprep.mubr.msk.f32.mxu1 %vm717_vm1, %v718_v35 }
  0x16   :  { %678 = vmatprep.subr.bf16.mxu1 %v716_v14 }
  0x17   :  { %631 = vmatpush3.bf16.msra.mxu0 %v712_v11 }
  0x18   :  { %632 = vmatprep.subr.bf16.mxu0 %v714_v12 }
  0x19   :  { %680 = vmatpush3.bf16.msra.mxu1 %v679_v20 }
  0x1a   :  { %681 = vmatprep.subr.bf16.mxu1 %v716_v14 }
  0x1b   :  { %633 = vmatpush3.bf16.msra.mxu0 %v714_v12 }
  0x1c   :  { %634 = vmatprep.subr.bf16.mxu0 %v715_v13 }
  0x1d   :  { %683 = vmatpush3.bf16.msra.mxu1 %v682_v23 }
  0x1e   :  { %684 = vmatprep.subr.bf16.mxu1 %v716_v14 }
  0x1f   :  { %635 = vmatpush3.bf16.msra.mxu0 %v715_v13 }
  0x21   :  { %686 = vmatpush3.bf16.msra.mxu1 %v685_v26 }
  0x22   :  { %637 = vmatmul.mubr.msk.bf16.vlgmr.msra.gmra.mrb[4].mxu0 %vm63_vm0, %v709_v10  ;;  %687 = vmatprep.subr.bf16.mxu1 %v716_v14 }
  0x25   :  { %689 = vmatpush3.bf16.msra.mxu1 %v688_v29 }
  0x26   :  { %690 = vmatprep.subr.bf16.mxu1 %v716_v14 }
  0x29   :  { %692 = vmatpush3.bf16.msra.mxu1 %v691_v32 }
  0x2a   :  { %693 = vmatprep.subr.bf16.mxu1 %v716_v14 }
  0x2d   :  { %695 = vmatpush3.bf16.msra.mxu1 %v694_v36 }
  0x2e   :  { %696 = vmatprep.subr.bf16.mxu1 %v716_v14 }
  0x31   :  { %698 = vmatpush3.bf16.msra.mxu1 %v697_v39 }
  0xe5   :  { %v614_v41 = vpop.f32.mrb[0].mxu0 }
  0xe6   :  { %v269_v43 = vrot.slane %v614_v41, 7  ;;  %v104_v44 = vpop.f32.mrb[1].mxu0 }
  0xe7   :  { %v267_v45 = vrot.slane %v104_v44, 7  ;;  %v615_v46 = vpop.f32.mrb[2].mxu0  ;;  %v626_v49 = vpop.f32.mrb[0].mxu1 }
  0xe8   :  { %v270_v47 = vrot.slane %v615_v46, 7  ;;  %v107_v48 = vpop.f32.mrb[3].mxu0  ;;  %v359_v51 = vrot.slane %v626_v49, 1  ;;  %v195_v52 = vpop.f32.mrb[1].mxu1 }
  0xe9   :  { %v268_v50 = vrot.slane %v107_v48, 7  ;;  %v357_v54 = vrot.slane %v195_v52, 1  ;;  %v627_v55 = vpop.f32.mrb[2].mxu1 }
  0xea   :  { %v275_v56 = vsel %vm271_vm2, %v270_v47, %v267_v45  ;;  %v272_v57 = vsel %vm271_vm2, %v269_v43, %v270_v47  ;;  %v360_v58 = vrot.slane %v627_v55, 1  ;;  %v198_v59 = vpop.f32.mrb[3].mxu1 }
  0xeb   :  { %v273_v60 = vsel %vm271_vm2, %v268_v50, %v269_v43  ;;  %v274_v61 = vsel %vm271_vm2, %v267_v45, %v268_v50  ;;  %v358_v62 = vrot.slane %v198_v59, 1  ;;  %v276_v12 = vsel %vm263_vm5, 0.0, %v275_v56 }
  0xec   :  { %v362_v63 = vsel %vm361_vm3, %v359_v51, %v360_v58  ;;  %v365_v0 = vsel %vm361_vm3, %v360_v58, %v357_v54  ;;  %v278_v9 = vsel %vm265_vm4, 0.0, %v273_v60 }
  0xed   :  { %v364_v2 = vsel %vm361_vm3, %v357_v54, %v358_v62  ;;  %v363_v4 = vsel %vm361_vm3, %v358_v62, %v359_v51  ;;  %v369_v20 = vsel %vm356_vm6, 0.0, %v365_v0 }
  0xee   :  { %v367_v23 = vsel %vm354_vm7, 0.0, %v363_v4 }
  0xf5   :  { %v638_v10 = vpop.f32.mrb[4].mxu0 }
  0xf6   :  { %v347_v11 = vadd.f32 %v638_v10, %v278_v9  ;;  %v338_v13 = vpop.f32.mrb[5].mxu0 }
  0xf7   :  { %v339_v14 = vadd.f32 %v338_v13, %v276_v12  ;;  %v639_v15 = vpop.f32.mrb[6].mxu0 }
  0xf8   :  { %v372_v16 = vadd.f32 %v362_v63, %v347_v11  ;;  %v350_v17 = vadd.f32 %v639_v15, %v272_v57  ;;  %v341_v18 = vpop.f32.mrb[7].mxu0 }
  0xf9   :  { %v370_v19 = vadd.f32 %v364_v2, %v339_v14  ;;  %v342_v21 = vadd.f32 %v341_v18, %v274_v61 }
  0xfa   :  { %v373_v22 = vadd.f32 %v369_v20, %v350_v17  ;;  %v405_v30 = vmul.f32 %v372_v16, %v372_v16 }
  0xfb   :  { %v371_v24 = vadd.f32 %v367_v23, %v342_v21  ;;  %v403_v26 = vmul.f32 %v370_v19, %v370_v19 }
  0xfc   :  { %v566_v25 = vpack.c.bf16 %v373_v22, %v372_v16  ;;  %v406_v33 = vmul.f32 %v373_v22, %v373_v22 }
  0xfd   :  { %v561_v27 = vpack.c.bf16 %v371_v24, %v370_v19  ;;  %v394_v28 = vadd.f32 %v371_v24, %v370_v19  ;;  %v404_v29 = vmul.f32 %v371_v24, %v371_v24 }
  0xfe   :  { %568 = vst [vmem:[%s856_s3 + $0x8] sm:$0xff] %v566_v25  }
  0xff   :  { %562 = vst [vmem:[%s856_s3] sm:$0xff] %v561_v27   ;;  %v395_v31 = vadd.f32 %v394_v28, %v372_v16  ;;  %v407_v32 = vadd.f32 %v404_v29, %v403_v26 }
 0x101   :  { %v396_v34 = vadd.f32 %v395_v31, %v373_v22  ;;  %v408_v35 = vadd.f32 %v407_v32, %v405_v30 }
 0x103   :  { %v397_v36 = vrot.slane %v396_v34, 4  ;;  %v409_v37 = vadd.f32 %v408_v35, %v406_v33 }
 0x105   :  { %v398_v38 = vadd.f32 %v397_v36, %v396_v34  ;;  %v410_v39 = vrot.slane %v409_v37, 4 }
 0x107   :  { %v399_v40 = vrot.slane %v398_v38, 2  ;;  %v411_v41 = vadd.f32 %v410_v39, %v409_v37 }
 0x109   :  { %v400_v42 = vadd.f32 %v399_v40, %v398_v38  ;;  %v412_v43 = vrot.slane %v411_v41, 2 }
 0x10b   :  { %v401_v44 = vrot.slane %v400_v42, 1  ;;  %v413_v45 = vadd.f32 %v412_v43, %v411_v41 }
 0x10d   :  { %v414_v46 = vrot.slane %v413_v45, 1  ;;  %v402_v47 = vadd.f32 %v401_v44, %v400_v42 }
 0x10f   :  { %v415_v48 = vadd.f32 %v414_v46, %v413_v45 }
 0x111   :  { %v417_v49 = vsel %vm416_vm8, %v402_v47, %v415_v48 }
 0x112   :  { %673 = vmatmul.mubr.f32.vlgmr.msra.gmra.mrb[4].mxu1 %v417_v49 }
 0x1e5   :  { %v500_v50 = vpop.f32.mrb[4].mxu1 }
 0x1e6   :  { %505 = vst.msk [vmem:[%s857_s4] sm:$0x3] %vm504_vm9, %v500_v50  ;;  %v674_v51 = vpop.f32.mrb[5].mxu1 }

// kernel: double_conv.4
= control target key start
LH: loop header
LB: loop body
LE: loop exit
PB: predicated region body
PF: predicated region fallthrough
CT: control target
= control target key end

     0   :  { %v910_v46 = vmov 0.0|0.0   ;;  %vm911_vm0 = vmmov 0   ;;  %vm533_vm7 = vcmask 1040384   ;;  %vm621_vm8 = vcmask 58368   ;;  %s1089_s3 = inlined_call_operand.vmem [shape: bf16[3,128,128], index: 3, kind: input, shape index: {}]   ;;  %s1090_s0 = inlined_call_operand.vmem [shape: bf16[32,128], index: 0, kind: input, shape index: {}]   ;;  %s1091_s1 = inlined_call_operand.vmem [shape: f32[1,128], index: 1, kind: input, shape index: {}]   ;;  %s1092_s2 = inlined_call_operand.vmem [shape: f32[1,128], index: 2, kind: input, shape index: {}]   ;;  %s1093_s4 = inlined_call_operand.vmem [shape: f32[128,8], index: 4, kind: input, shape index: {}]   ;;  %s1094_s5 = inlined_call_operand.vmem [shape: bf16[32,128], index: 5, kind: output, shape index: {0}]   ;;  %s1095_s6 = inlined_call_operand.vmem [shape: f32[1,2,8], index: 6, kind: output, shape index: {1}]  }
   0x1   :  { %v886_v0 = vld [vmem:[%s1089_s3] sm:$0xff]   ;;  %v887_v1 = vld [vmem:[%s1089_s3 + $0x8] sm:$0xff]   ;;  %v888_v2 = vld [vmem:[%s1089_s3 + $0x10] sm:$0xff]  }
   0x2   :  { %764 = vmatprep.subr.bf16.mxu0 %v886_v0  ;;  %v893_v3 = vld [vmem:[%s1089_s3 + $0x80] sm:$0xff]   ;;  %v889_v4 = vld [vmem:[%s1089_s3 + $0x18] sm:$0xff]   ;;  %v895_v10 = vld [vmem:[%s1089_s3 + $0x88] sm:$0xff]  }
   0x3   :  { %765 = vmatpush3.bf16.msra.mxu0 %v886_v0  ;;  %784 = vmatprep.subr.bf16.mxu1 %v893_v3  ;;  %v698_v5 = vld [vmem:[%s1090_s0] sm:$0xff]   ;;  %v715_v11 = vld [vmem:[%s1090_s0 + $0x8] sm:$0xff]   ;;  %v897_v15 = vld [vmem:[%s1089_s3 + $0x90] sm:$0xff]  }
   0x4   :  { %766 = vmatprep.subr.bf16.mxu0 %v887_v1  ;;  %v631_v6 = vld [vmem:[%s1091_s1] ss:$0 sm:$0xff]  ;;  %785 = vmatpush3.bf16.msra.mxu1 %v893_v3  ;;  %v699_v8 = vunpack.c.l.bf16 %v698_v5  ;;  %v700_v9 = vunpack.c.h.bf16 %v698_v5  ;;  %v703_v18 = vunpack.c.l.bf16 %v715_v11  ;;  %v704_v19 = vunpack.c.h.bf16 %v715_v11  ;;  %v899_v20 = vld [vmem:[%s1089_s3 + $0x98] sm:$0xff]   ;;  %v891_v21 = vld [vmem:[%s1089_s3 + $0x28] sm:$0xff]  }
   0x5   :  { %v632_v7 = vld [vmem:[%s1092_s2] ss:$0 sm:$0xff]  ;;  %786 = vmatprep.subr.bf16.mxu1 %v895_v10  ;;  %v892_v28 = vld [vmem:[%s1089_s3 + $0x30] sm:$0xff]   ;;  %v903_v31 = vld [vmem:[%s1089_s3 + $0xa8] sm:$0xff]   ;;  %v912_v3 = vmov 0.0  }
   0x6   :  { %v890_v12 = vld [vmem:[%s1089_s3 + $0x20] sm:$0xff]   ;;  %v38_v13 = vmul.f32 %v699_v8, %v631_v6  ;;  %v39_v14 = vmul.f32 %v700_v9, %v631_v6  ;;  %v40_v25 = vmul.f32 %v703_v18, %v631_v6  ;;  %v41_v26 = vmul.f32 %v704_v19, %v631_v6  ;;  %v894_v32 = vld [vmem:[%s1089_s3 + $0x38] sm:$0xff]   ;;  %v905_v35 = vld [vmem:[%s1089_s3 + $0xb0] sm:$0xff]  }
   0x7   :  { %767 = vmatpush3.bf16.msra.mxu0 %v887_v1  ;;  %v901_v27 = vld [vmem:[%s1089_s3 + $0xa0] sm:$0xff]   ;;  %v907_v38 = vld [vmem:[%s1089_s3 + $0xb8] sm:$0xff]   ;;  %v898_v39 = vld [vmem:[%s1089_s3 + $0x48] sm:$0xff]   ;;  %v303_v8 = vlaneseq }
   0x8   :  { %768 = vmatprep.subr.bf16.mxu0 %v888_v2  ;;  %v49_v16 = vadd.f32 %v632_v7, %v38_v13  ;;  %v50_v17 = vadd.f32 %v632_v7, %v39_v14  ;;  %787 = vmatpush3.bf16.msra.mxu1 %v895_v10  ;;  %v51_v29 = vadd.f32 %v632_v7, %v40_v25  ;;  %v896_v36 = vld [vmem:[%s1089_s3 + $0x40] sm:$0xff]   ;;  %v900_v40 = vld [vmem:[%s1089_s3 + $0x50] sm:$0xff]   ;;  %v902_v41 = vld [vmem:[%s1089_s3 + $0x58] sm:$0xff]  }
   0x9   :  { %788 = vmatprep.subr.bf16.mxu1 %v897_v15  ;;  %v52_v30 = vadd.f32 %v632_v7, %v41_v26  ;;  %v904_v42 = vld [vmem:[%s1089_s3 + $0x60] sm:$0xff]   ;;  %v906_v43 = vld [vmem:[%s1089_s3 + $0x68] sm:$0xff]   ;;  %v908_v44 = vld [vmem:[%s1089_s3 + $0x70] sm:$0xff]   ;;  %v304_v10 = vshrl.u32 %v303_v8, 7 }
   0xa   :  { %v53_v22 = vmax.f32 %v49_v16, 0.0  ;;  %v54_v23 = vmax.f32 %v50_v17, 0.0  ;;  %v55_v33 = vmax.f32 %v51_v29, 0.0  ;;  %v909_v45 = vld [vmem:[%s1089_s3 + $0x78] sm:$0xff]   ;;  %v535_v47 = vld [vmem:[%s1093_s4] sm:$0xff]  ;;  %v536_v48 = vld [vmem:[%s1093_s4 + $0x8] sm:$0xff] }
   0xb   :  { %769 = vmatpush3.bf16.msra.mxu0 %v888_v2  ;;  %v56_v34 = vmax.f32 %v52_v30, 0.0  ;;  %v860_v49 = vpack.c.bf16 %v536_v48, %v535_v47  ;;  %v537_v50 = vld [vmem:[%s1093_s4 + $0x10] sm:$0xff]  ;;  %v538_v51 = vld [vmem:[%s1093_s4 + $0x18] sm:$0xff]  ;;  %v539_v53 = vld [vmem:[%s1093_s4 + $0x20] sm:$0xff]  ;;  %vm364_vm1 = vcmp.lt.s32.totalorder %v304_v10, 1  ;;  %vm478_vm2 = vcmp.lt.s32.totalorder %v304_v10, 7 }
   0xc   :  { %770 = vmatprep.subr.bf16.mxu0 %v889_v4  ;;  %v57_v24 = vpack.c.bf16 %v54_v23, %v53_v22  ;;  %789 = vmatpush3.bf16.msra.mxu1 %v897_v15  ;;  %v863_v52 = vpack.c.bf16 %v538_v51, %v537_v50  ;;  %v540_v54 = vld [vmem:[%s1093_s4 + $0x28] sm:$0xff]  ;;  %v541_v56 = vld [vmem:[%s1093_s4 + $0x30] sm:$0xff]  ;;  %v542_v57 = vld [vmem:[%s1093_s4 + $0x38] sm:$0xff] }
   0xd   :  { %790 = vmatprep.subr.bf16.mxu1 %v899_v20  ;;  %v58_v37 = vpack.c.bf16 %v56_v34, %v55_v33  ;;  %v866_v55 = vpack.c.bf16 %v540_v54, %v539_v53  ;;  %v869_v58 = vpack.c.bf16 %v542_v57, %v541_v56  ;;  %v543_v59 = vld [vmem:[%s1093_s4 + $0x40] sm:$0xff]  ;;  %v544_v60 = vld [vmem:[%s1093_s4 + $0x48] sm:$0xff]  ;;  %v545_v62 = vld [vmem:[%s1093_s4 + $0x50] sm:$0xff]  ;;  %v306_v34 = vadd.s32 16, %v304_v10 }
   0xe   :  { %780 = vmatprep.mubr.bf16.mxu0 %v57_v24  ;;  %800 = vmatprep.mubr.bf16.mxu1 %v57_v24  ;;  %v872_v61 = vpack.c.bf16 %v544_v60, %v543_v59  ;;  %v546_v63 = vld [vmem:[%s1093_s4 + $0x58] sm:$0xff]  ;;  %v547_v1 = vld [vmem:[%s1093_s4 + $0x60] sm:$0xff]  ;;  %v548_v2 = vld [vmem:[%s1093_s4 + $0x68] sm:$0xff] }
   0xf   :  { %771 = vmatpush3.bf16.msra.mxu0 %v889_v4  ;;  %v875_v0 = vpack.c.bf16 %v546_v63, %v545_v62  ;;  %v878_v4 = vpack.c.bf16 %v548_v2, %v547_v1  ;;  %v549_v5 = vld [vmem:[%s1093_s4 + $0x70] sm:$0xff]  ;;  %v550_v6 = vld [vmem:[%s1093_s4 + $0x78] sm:$0xff] }
  0x10   :  { %772 = vmatprep.subr.bf16.mxu0 %v890_v12  ;;  %791 = vmatpush3.bf16.msra.mxu1 %v899_v20  ;;  %v881_v7 = vpack.c.bf16 %v550_v6, %v549_v5 }
  0x11   :  { %792 = vmatprep.subr.bf16.mxu1 %v901_v27 }
  0x13   :  { %773 = vmatpush3.bf16.msra.mxu0 %v890_v12 }
  0x14   :  { %774 = vmatprep.subr.bf16.mxu0 %v891_v21  ;;  %793 = vmatpush3.bf16.msra.mxu1 %v901_v27 }
  0x15   :  { %794 = vmatprep.subr.bf16.mxu1 %v903_v31 }
  0x17   :  { %775 = vmatpush3.bf16.msra.mxu0 %v891_v21 }
  0x18   :  { %776 = vmatprep.subr.bf16.mxu0 %v892_v28  ;;  %795 = vmatpush3.bf16.msra.mxu1 %v903_v31 }
  0x19   :  { %796 = vmatprep.subr.bf16.mxu1 %v905_v35 }
  0x1b   :  { %777 = vmatpush3.bf16.msra.mxu0 %v892_v28 }
  0x1c   :  { %778 = vmatprep.subr.bf16.mxu0 %v894_v32  ;;  %797 = vmatpush3.bf16.msra.mxu1 %v905_v35  ;;  %v326_v35 = vand.u32 15, %v306_v34 }
  0x1d   :  { %798 = vmatprep.subr.bf16.mxu1 %v907_v38 }
  0x1e   :  { %vm358_vm3 = vcmp.eq.s32.totalorder %v326_v35, 0 }
  0x1f   :  { %779 = vmatpush3.bf16.msra.mxu0 %v894_v32 }
  0x20   :  { %804 = vmatprep.subr.bf16.mxu0 %v896_v36  ;;  %799 = vmatpush3.bf16.msra.mxu1 %v907_v38  ;;  %v305_v38 = vadd.s32 8, %v304_v10 }
  0x21   :  { %859 = vmatprep.subr.bf16.mxu1 %v910_v46 }
  0x22   :  { %781 = vmatmul.mubr.bf16.vlgmr.msra.gmra.mrb[0].mxu0 %v58_v37 }
  0x23   :  { %805 = vmatpush3.bf16.msra.mxu0 %v896_v36  ;;  %820 = vmatprep.mubr.bf16.mxu0 %v57_v24  ;;  %v307_v36 = vadd.s32 24, %v304_v10 }
  0x24   :  { %806 = vmatprep.subr.bf16.mxu0 %v898_v39  ;;  %801 = vmatmul.mubr.bf16.vlgmr.msra.gmra.mrb[0].mxu1 %v58_v37 }
  0x25   :  { %861 = vmatpush3.bf16.msra.mxu1 %v860_v49  ;;  %856 = vmatprep.mubr.msk.f32.mxu1 %vm911_vm0, %v912_v3 }
  0x26   :  { %862 = vmatprep.subr.bf16.mxu1 %v910_v46 }
  0x27   :  { %807 = vmatpush3.bf16.msra.mxu0 %v898_v39  ;;  %v333_v39 = vand.u32 15, %v307_v36 }
  0x28   :  { %808 = vmatprep.subr.bf16.mxu0 %v900_v40 }
  0x29   :  { %864 = vmatpush3.bf16.msra.mxu1 %v863_v52  ;;  %vm473_vm5 = vcmp.eq.s32.totalorder %v333_v39, 15 }
  0x2a   :  { %865 = vmatprep.subr.bf16.mxu1 %v910_v46 }
  0x2b   :  { %809 = vmatpush3.bf16.msra.mxu0 %v900_v40  ;;  %v319_v40 = vand.u32 15, %v305_v38 }
  0x2c   :  { %810 = vmatprep.subr.bf16.mxu0 %v902_v41 }
  0x2d   :  { %867 = vmatpush3.bf16.msra.mxu1 %v866_v55  ;;  %vm471_vm6 = vcmp.eq.s32.totalorder %v319_v40, 15 }
  0x2e   :  { %868 = vmatprep.subr.bf16.mxu1 %v910_v46 }
  0x2f   :  { %811 = vmatpush3.bf16.msra.mxu0 %v902_v41 }
  0x30   :  { %812 = vmatprep.subr.bf16.mxu0 %v904_v42 }
  0x31   :  { %870 = vmatpush3.bf16.msra.mxu1 %v869_v58 }
  0x32   :  { %871 = vmatprep.subr.bf16.mxu1 %v910_v46 }
  0x33   :  { %813 = vmatpush3.bf16.msra.mxu0 %v904_v42 }
  0x34   :  { %814 = vmatprep.subr.bf16.mxu0 %v906_v43 }
  0x35   :  { %873 = vmatpush3.bf16.msra.mxu1 %v872_v61 }
  0x36   :  { %874 = vmatprep.subr.bf16.mxu1 %v910_v46 }
  0x37   :  { %815 = vmatpush3.bf16.msra.mxu0 %v906_v43 }
  0x38   :  { %816 = vmatprep.subr.bf16.mxu0 %v908_v44 }
  0x39   :  { %876 = vmatpush3.bf16.msra.mxu1 %v875_v0 }
  0x3a   :  { %877 = vmatprep.subr.bf16.mxu1 %v910_v46 }
  0x3b   :  { %817 = vmatpush3.bf16.msra.mxu0 %v908_v44 }
  0x3c   :  { %818 = vmatprep.subr.bf16.mxu0 %v909_v45 }
  0x3d   :  { %879 = vmatpush3.bf16.msra.mxu1 %v878_v4 }
  0x3e   :  { %880 = vmatprep.subr.bf16.mxu1 %v910_v46 }
  0x3f   :  { %819 = vmatpush3.bf16.msra.mxu0 %v909_v45 }
  0x41   :  { %882 = vmatpush3.bf16.msra.mxu1 %v881_v7 }
  0x42   :  { %821 = vmatmul.mubr.bf16.vlgmr.msra.gmra.mrb[4].mxu0 %v58_v37  ;;  %v312_v37 = vand.u32 15, %v304_v10 }
  0x44   :  { %vm356_vm4 = vcmp.eq.s32.totalorder %v312_v37, 0 }
  0xf5   :  { %v782_v9 = vpop.f32.mrb[0].mxu0 }
  0xf6   :  { %v362_v11 = vrot.slane %v782_v9, 7  ;;  %v157_v12 = vpop.f32.mrb[1].mxu0 }
  0xf7   :  { %v360_v13 = vrot.slane %v157_v12, 7  ;;  %v783_v14 = vpop.f32.mrb[2].mxu0  ;;  %v802_v22 = vpop.f32.mrb[0].mxu1 }
  0xf8   :  { %v363_v15 = vrot.slane %v783_v14, 7  ;;  %v160_v16 = vpop.f32.mrb[3].mxu0  ;;  %v476_v23 = vrot.slane %v802_v22, 1  ;;  %v288_v24 = vpop.f32.mrb[1].mxu1 }
  0xf9   :  { %v361_v17 = vrot.slane %v160_v16, 7  ;;  %v474_v25 = vrot.slane %v288_v24, 1  ;;  %v803_v26 = vpop.f32.mrb[2].mxu1 }
  0xfa   :  { %v368_v18 = vsel %vm364_vm1, %v363_v15, %v360_v13  ;;  %v365_v19 = vsel %vm364_vm1, %v362_v11, %v363_v15  ;;  %v477_v27 = vrot.slane %v803_v26, 1  ;;  %v291_v28 = vpop.f32.mrb[3].mxu1 }
  0xfb   :  { %v366_v20 = vsel %vm364_vm1, %v361_v17, %v362_v11  ;;  %v367_v21 = vsel %vm364_vm1, %v360_v13, %v361_v17  ;;  %v475_v29 = vrot.slane %v291_v28, 1  ;;  %v369_v44 = vsel %vm356_vm4, 0.0, %v368_v18 }
  0xfc   :  { %v479_v30 = vsel %vm478_vm2, %v476_v23, %v477_v27  ;;  %v482_v31 = vsel %vm478_vm2, %v477_v27, %v474_v25  ;;  %v371_v41 = vsel %vm358_vm3, 0.0, %v366_v20 }
  0xfd   :  { %v481_v32 = vsel %vm478_vm2, %v474_v25, %v475_v29  ;;  %v480_v33 = vsel %vm478_vm2, %v475_v29, %v476_v23  ;;  %v486_v52 = vsel %vm473_vm5, 0.0, %v482_v31 }
  0xfe   :  { %v484_v55 = vsel %vm471_vm6, 0.0, %v480_v33 }
 0x115   :  { %v822_v42 = vpop.f32.mrb[4].mxu0 }
 0x116   :  { %v464_v43 = vadd.f32 %v822_v42, %v371_v41  ;;  %v455_v45 = vpop.f32.mrb[5].mxu0 }
 0x117   :  { %v456_v46 = vadd.f32 %v455_v45, %v369_v44  ;;  %v823_v47 = vpop.f32.mrb[6].mxu0 }
 0x118   :  { %v489_v48 = vadd.f32 %v479_v30, %v464_v43  ;;  %v467_v49 = vadd.f32 %v823_v47, %v365_v19  ;;  %v458_v50 = vpop.f32.mrb[7].mxu0 }
 0x119   :  { %v487_v51 = vadd.f32 %v481_v32, %v456_v46  ;;  %v459_v53 = vadd.f32 %v458_v50, %v367_v21 }
 0x11a   :  { %v490_v54 = vadd.f32 %v486_v52, %v467_v49  ;;  %v522_v62 = vmul.f32 %v489_v48, %v489_v48 }
 0x11b   :  { %v488_v56 = vadd.f32 %v484_v55, %v459_v53  ;;  %v520_v58 = vmul.f32 %v487_v51, %v487_v51 }
 0x11c   :  { %v713_v57 = vpack.c.bf16 %v490_v54, %v489_v48  ;;  %v523_v1 = vmul.f32 %v490_v54, %v490_v54 }
 0x11d   :  { %v708_v59 = vpack.c.bf16 %v488_v56, %v487_v51  ;;  %v511_v60 = vadd.f32 %v488_v56, %v487_v51  ;;  %v521_v61 = vmul.f32 %v488_v56, %v488_v56 }
 0x11e   :  { %716 = vst [vmem:[%s1094_s5 + $0x8] sm:$0xff] %v713_v57  }
 0x11f   :  { %709 = vst [vmem:[%s1094_s5] sm:$0xff] %v708_v59   ;;  %v512_v63 = vadd.f32 %v511_v60, %v489_v48  ;;  %v524_v0 = vadd.f32 %v521_v61, %v520_v58 }
 0x121   :  { %v513_v2 = vadd.f32 %v512_v63, %v490_v54  ;;  %v525_v3 = vadd.f32 %v524_v0, %v522_v62 }
 0x123   :  { %v514_v4 = vrot.slane %v513_v2, 4  ;;  %v526_v5 = vadd.f32 %v525_v3, %v523_v1 }
 0x125   :  { %v515_v6 = vadd.f32 %v514_v4, %v513_v2  ;;  %v527_v7 = vrot.slane %v526_v5, 4 }
 0x127   :  { %v516_v8 = vrot.slane %v515_v6, 2  ;;  %v528_v9 = vadd.f32 %v527_v7, %v526_v5 }
 0x129   :  { %v517_v10 = vadd.f32 %v516_v8, %v515_v6  ;;  %v529_v11 = vrot.slane %v528_v9, 2 }
 0x12b   :  { %v518_v12 = vrot.slane %v517_v10, 1  ;;  %v530_v13 = vadd.f32 %v529_v11, %v528_v9 }
 0x12d   :  { %v531_v14 = vrot.slane %v530_v13, 1  ;;  %v519_v15 = vadd.f32 %v518_v12, %v517_v10 }
 0x12f   :  { %v532_v16 = vadd.f32 %v531_v14, %v530_v13 }
 0x131   :  { %v534_v17 = vsel %vm533_vm7, %v519_v15, %v532_v16 }
 0x132   :  { %857 = vmatmul.mubr.f32.vlgmr.msra.gmra.mrb[4].mxu1 %v534_v17 }
 0x205   :  { %v617_v18 = vpop.f32.mrb[4].mxu1 }
 0x206   :  { %622 = vst.msk [vmem:[%s1095_s6] sm:$0x3] %vm621_vm8, %v617_v18  ;;  %v858_v19 = vpop.f32.mrb[5].mxu1 }

// kernel: double_conv.5
= control target key start
LH: loop header
LB: loop body
LE: loop exit
PB: predicated region body
PF: predicated region fallthrough
CT: control target
= control target key end

     0   :  { %s111_s0 = inlined_call_operand.vmem [shape: bf16[32,128], index: 0, kind: input, shape index: {}]   ;;  %s112_s1 = inlined_call_operand.vmem [shape: f32[1,128], index: 1, kind: input, shape index: {}]   ;;  %s113_s2 = inlined_call_operand.vmem [shape: f32[1,128], index: 2, kind: input, shape index: {}]   ;;  %s114_s3 = inlined_call_operand.vmem [shape: f32[32,128], index: 3, kind: output, shape index: {}]  }
   0x1   :  { %v59_v0 = vld [vmem:[%s111_s0] sm:$0xff]   ;;  %v66_v4 = vld [vmem:[%s111_s0 + $0x8] sm:$0xff]  }
   0x2   :  { %v56_v1 = vld [vmem:[%s112_s1] ss:$0 sm:$0xff]  ;;  %v60_v2 = vunpack.c.l.bf16 %v59_v0  ;;  %v61_v3 = vunpack.c.h.bf16 %v59_v0  ;;  %v64_v6 = vunpack.c.l.bf16 %v66_v4  ;;  %v65_v7 = vunpack.c.h.bf16 %v66_v4 }
   0x3   :  { %v57_v5 = vld [vmem:[%s113_s2] ss:$0 sm:$0xff] }
   0x4   :  { %v29_v8 = vmul.f32 %v60_v2, %v56_v1  ;;  %v30_v9 = vmul.f32 %v61_v3, %v56_v1  ;;  %v31_v10 = vmul.f32 %v64_v6, %v56_v1  ;;  %v32_v11 = vmul.f32 %v65_v7, %v56_v1 }
   0x6   :  { %v40_v12 = vadd.f32 %v57_v5, %v29_v8  ;;  %v41_v13 = vadd.f32 %v57_v5, %v30_v9  ;;  %v42_v14 = vadd.f32 %v57_v5, %v31_v10  ;;  %v43_v15 = vadd.f32 %v57_v5, %v32_v11 }
   0x8   :  { %v44_v16 = vmax.f32 %v40_v12, 0.0  ;;  %v45_v17 = vmax.f32 %v41_v13, 0.0  ;;  %v46_v18 = vmax.f32 %v42_v14, 0.0  ;;  %v47_v19 = vmax.f32 %v43_v15, 0.0 }
   0xa   :  { %48 = vst [vmem:[%s114_s3] sm:$0xff] %v44_v16  ;;  %49 = vst [vmem:[%s114_s3 + $0x8] sm:$0xff] %v45_v17 }
   0xb   :  { %50 = vst [vmem:[%s114_s3 + $0x10] sm:$0xff] %v46_v18  ;;  %51 = vst [vmem:[%s114_s3 + $0x18] sm:$0xff] %v47_v19 }

</bundles_post_ra>
